<compile_context>
chip_gen: v6e
topology: v6e:2x2x1
jax: 0.10.0
libtpu: 0.0.40
codegen_flags: <defaults>
</compile_context>

<pallas_src>
import functools

import jax
import jax.numpy as jnp
from jax.experimental import pallas as pl
from jax.experimental.pallas import tpu as pltpu

_LANE_COLS = 512                     # lane-dense slab width (multiple of 128)
_TARGET_BLOCK_BYTES = 4 << 20        # ~4 MiB per operand block (HBM-roofline sweet spot)
_MIN_SPLIT_BLOCK_BYTES = 512 << 10   # never shrink blocks below this just for step count
_MIN_GRID_STEPS = 8                  # >= ~4 steps per TensorCore on v7x, pipeline overlap


def _swish_kernel(x_ref, o_ref):
    """swish(x) = x * sigmoid(x), elementwise on one VMEM tile."""
    x = x_ref[...]
    # bf16 has native VALU/EUP on v6e/v7x (Mosaic upcasts internally elsewhere);
    # all other dtypes compute in f32.
    # TODO(synk): integer inputs are computed in f32 and truncated back on the
    # final cast (PyTorch's sigmoid rejects integer tensors outright).
    if x.dtype not in (jnp.dtype(jnp.float32), jnp.dtype(jnp.bfloat16)):
        x = x.astype(jnp.float32)
    sig = 1.0 / (1.0 + jnp.exp(-x))          # exp -> EUP slot; exact divide
    o_ref[...] = (x * sig).astype(o_ref.dtype)


@functools.lru_cache(maxsize=None)
def _vmem_budget_bytes() -> int:
    """Explicit scoped-VMEM limit: generous, but <= half of physical VMEM
    (v7x has only 64 MiB/TC; v5e/v6e have 128 MiB)."""
    try:
        physical = int(pltpu.get_tpu_info().vmem_capacity_bytes)
    except Exception:  # conservative fallback
        physical = 64 << 20
    return max(8 << 20, min(48 << 20, physical // 2))


def _row_granule(dtype) -> int:
    """Sublane packing granule: 8 rows for 32-bit, 16 for 16-bit, 32 for 8-bit,
    so block rows land on native packed-sublane tiles (unmasked vst)."""
    return max(8, 32 // max(1, jnp.dtype(dtype).itemsize))


def _round_up(v: int, g: int) -> int:
    return ((v + g - 1) // g) * g


def _choose_row_tile(rows: int, row_bytes: int, granule: int, target_bytes: int) -> int:
    if rows <= granule:
        return rows                          # single full-extent block
    tr = max(granule, (target_bytes // row_bytes) // granule * granule)
    if pl.cdiv(rows, tr) < _MIN_GRID_STEPS:
        # Aim for ~_MIN_GRID_STEPS steps (v7x megacore balance + DMA overlap),
        # but keep blocks >= ~512 KiB so per-step overhead stays negligible.
        tr_steps = _round_up(pl.cdiv(rows, _MIN_GRID_STEPS), granule)
        tr_floor = _round_up(pl.cdiv(_MIN_SPLIT_BLOCK_BYTES, row_bytes), granule)
        tr = max(granule, min(tr, max(tr_steps, tr_floor)))
    return min(tr, rows)


def _swish_2d(x2: jax.Array) -> jax.Array:
    """Run the swish kernel over a 2-D slab (rows, cols)."""
    rows, cols = x2.shape
    dtype = x2.dtype
    granule = _row_granule(dtype)
    budget = _vmem_budget_bytes()
    target = min(_TARGET_BLOCK_BYTES, budget // 8)   # 2 operands x 2 buffers + headroom
    tr = _choose_row_tile(rows, cols * jnp.dtype(dtype).itemsize, granule, target)
    grid = (pl.cdiv(rows, tr),)
    return pl.pallas_call(
        _swish_kernel,
        out_shape=jax.ShapeDtypeStruct((rows, cols), dtype),
        grid_spec=pltpu.PrefetchScalarGridSpec(
            num_scalar_prefetch=0,
            grid=grid,
            in_specs=[pl.BlockSpec((tr, cols), lambda i: (i, 0))],
            out_specs=pl.BlockSpec((tr, cols), lambda i: (i, 0)),
        ),
        compiler_params=pltpu.CompilerParams(
            dimension_semantics=("parallel",),
            vmem_limit_bytes=budget,
        ),
    )(x2)


def swish(x: jax.Array) -> jax.Array:
    """Elementwise swish via Pallas; preserves shape and dtype."""
    orig_shape = x.shape
    n = x.size
    if n == 0:
        return x
    flat = x.reshape(-1)
    cols = _LANE_COLS
    rem = n % cols
    if rem == 0:
        # Copy-free reshape to a lane-dense (rows, 512) slab.
        out = _swish_2d(flat.reshape(-1, cols)).reshape(-1)
    else:
        # Ragged size: main kernel on the aligned prefix (no whole-array
        # pad/slice), plus one tiny full-extent-block call for the tail.
        n_main = n - rem
        parts = []
        if n_main:
            parts.append(_swish_2d(flat[:n_main].reshape(-1, cols)).reshape(-1))
        parts.append(_swish_2d(flat[n_main:].reshape(1, rem)).reshape(-1))
        out = jnp.concatenate(parts) if len(parts) > 1 else parts[0]
    return out.reshape(orig_shape)


if __name__ == "__main__":
    key = jax.random.PRNGKey(0)
    # NCHW-style input, as Swish is typically used after convolutions.
    x = jax.random.normal(key, (2, 4, 16, 16), dtype=jnp.float32)

    y = jax.block_until_ready(swish(x))
    y_ref = x * jax.nn.sigmoid(x)
    assert y.shape == x.shape and y.dtype == x.dtype
    assert jnp.allclose(y, y_ref, atol=1e-5, rtol=1e-5)

    # Also exercise the ragged (non-multiple-of-512) path.
    x2 = jax.random.normal(jax.random.PRNGKey(1), (5, 130), dtype=jnp.float32)
    y2 = jax.block_until_ready(swish(x2))
    assert jnp.allclose(y2, x2 * jax.nn.sigmoid(x2), atol=1e-5, rtol=1e-5)

    print("KERNEL_OK")
</pallas_src>

<mosaic_0001>
module attributes {stable_mosaic.version = 11 : i64} {
  func.func @_swish_kernel(%arg0: i32, %arg1: memref<4x512xf32, #tpu.memory_space<vmem>>, %arg2: memref<4x512xf32, #tpu.memory_space<vmem>>) attributes {dimension_semantics = [#tpu.dimension_semantics<parallel>], iteration_bounds = array<i64: 1>, scalar_prefetch = 0 : i64, scratch_operands = 0 : i64, tpu.core_type = #tpu.core_type<tc>, window_params = [{transform_indices = @transform_0, window_bounds = array<i64: 4, 512>}, {transform_indices = @transform_1, window_bounds = array<i64: 4, 512>}]} {
    %c0 = arith.constant 0 : index
    %c0_0 = arith.constant 0 : index
    %0 = vector.load %arg1[%c0, %c0_0] : memref<4x512xf32, #tpu.memory_space<vmem>>, vector<4x512xf32>
    %cst = arith.constant 0.000000e+00 : f32
    %1 = vector.broadcast %cst : f32 to vector<4x512xf32>
    %2 = arith.subf %1, %0 : vector<4x512xf32>
    %3 = math.exp %2 : vector<4x512xf32>
    %cst_1 = arith.constant 1.000000e+00 : f32
    %4 = vector.broadcast %cst_1 : f32 to vector<4x512xf32>
    %5 = arith.addf %4, %3 : vector<4x512xf32>
    %cst_2 = arith.constant 1.000000e+00 : f32
    %6 = vector.broadcast %cst_2 : f32 to vector<4x512xf32>
    %7 = arith.divf %6, %5 : vector<4x512xf32>
    %8 = arith.mulf %0, %7 : vector<4x512xf32>
    %c0_3 = arith.constant 0 : index
    %c0_4 = arith.constant 0 : index
    %9 = vector.load %arg2[%c0_3, %c0_4] : memref<4x512xf32, #tpu.memory_space<vmem>>, vector<4x512xf32>
    tpu.vector_store %arg2[%c0_3, %c0_4], %8 {strides = array<i32>} : memref<4x512xf32, #tpu.memory_space<vmem>>, vector<4x512xf32>,
    return
  }
  func.func @transform_0(%arg0: i32) -> (i32, i32) {
    %c0_i32 = arith.constant 0 : i32
    %c0_i32_0 = arith.constant 0 : i32
    return %arg0, %c0_i32 : i32, i32
  }
  func.func @transform_1(%arg0: i32) -> (i32, i32) {
    %c0_i32 = arith.constant 0 : i32
    %c0_i32_0 = arith.constant 0 : i32
    return %arg0, %c0_i32 : i32, i32
  }
}

</mosaic_0001>

<bundles_post_ra>
// kernel: tpu_custom_call.1
= control target key start
LH: loop header
LB: loop body
LE: loop exit
PB: predicated region body
PF: predicated region fallthrough
CT: control target
= control target key end

     0   :  { %6 = vsyncpa [#allocation3], 0  ;;  %s126_s0 = inlined_call_operand.hbm [shape: f32[4,512], index: 0, kind: input, shape index: {}]   ;;  %s127_s1 = inlined_call_operand.hbm [shape: f32[4,512], index: 1, kind: output, shape index: {}]  }
   0x1   :  { %7 = vsyncpa [#allocation4], 0  ;;  %s108_s6 = smov [#allocation2]  }
   0x2   :  { %s14_s7 = sshll.u32 %s108_s6, 4  ;;  %s15_s7 = int_to_ptr.vmem [resolvable:$true] %s14_s7 }
   0x3   :  { %s72_s8 = scalar_lea.vmem %s15_s7, 256  ;;  %p77_p1 = scmp.lt.s32.totalorder %s15_s7, %s15_s7 }
   0x4   :  { %p73_p0 = scmp.ne.s32.totalorder %s15_s7, %s72_s8  ;;  %p78_p2 = scmp.lt.s32.totalorder %s72_s8, %s72_s8 }
   0x6   :  { %p79_p3 = por %p78_p2, %p77_p1 }
   0x8   :  { %p80_p4 = pnand %p79_p3, %p73_p0 }
   0xa   :  { %83 = shalt.err (!%p80_p4)
}
   0xb   :  { %17 = dma.hbm_to_vmem [thread:$0]  %s126_s0, 256, %s15_s7, [#allocation3]  }
   0xc   :  { %104 = dma.done.wait [#allocation3], 256  }
   0xd   :  { %105 = vsyncadd [#allocation3], 4294967040  ;;  %v21_v0 = vld [vmem:[#allocation2] sm:$0xff]  ;;  %v22_v1 = vld [vmem:[#allocation2 + $0x8] sm:$0xff]  ;;  %s109_s11 = smov [#allocation5]  }
   0xe   :  { %v23_v2 = vsub.f32 0.0, %v21_v0  ;;  %v24_v3 = vsub.f32 0.0, %v22_v1  ;;  %s45_s12 = sshll.u32 %s109_s11, 4  ;;  %s46_s12 = int_to_ptr.vmem [resolvable:$true] %s45_s12 }
   0xf   :  { %s84_s0 = scalar_lea.vmem %s46_s12, 256  ;;  %p89_p6 = scmp.lt.s32.totalorder %s46_s12, %s46_s12 }
  0x10   :  { %v25_v4 = vmul.f32 1.442695, %v23_v2  ;;  %v27_v5 = vmul.f32 1.442695, %v24_v3  ;;  %p85_p5 = scmp.ne.s32.totalorder %s46_s12, %s84_s0  ;;  %p90_p7 = scmp.lt.s32.totalorder %s84_s0, %s84_s0 }
  0x12   :  { %56 = vpow2.f32 %v25_v4  ;;  %p91_p8 = por %p90_p7, %p89_p6 }
  0x13   :  { %58 = vpow2.f32 %v27_v5 }
  0x14   :  { %p92_p9 = pnand %p91_p8, %p85_p5 }
  0x1f   :  { %v57_v6 = vpop.eup %56 }
  0x20   :  { %v59_v7 = vpop.eup %58  ;;  %v29_v8 = vadd.f32 1.0, %v57_v6 }
  0x21   :  { %v30_v9 = vadd.f32 1.0, %v59_v7 }
  0x22   :  { %60 = vrcp.f32 %v29_v8 }
  0x23   :  { %62 = vrcp.f32 %v30_v9 }
  0x2f   :  { %v61_v10 = vpop.eup %60 }
  0x30   :  { %v63_v11 = vpop.eup %62  ;;  %v35_v12 = vmul.f32 %v61_v10, %v21_v0 }
  0x31   :  { %v36_v13 = vmul.f32 %v63_v11, %v22_v1 }
  0x32   :  { %37 = vst [vmem:[#allocation5] sm:$0xff] %v35_v12 }
  0x33   :  { %38 = vst [vmem:[#allocation5 + $0x8] sm:$0xff] %v36_v13 }
  0x34   :  { %95 = shalt.err (!%p92_p9)
}
  0x35   :  { %48 = dma.vmem_to_hbm [thread:$0]  %s46_s12, 256, %s127_s1, [#allocation4]  }
  0x36   :  { %106 = dma.done.wait [#allocation4], 256  }
  0x37   :  { %107 = vsyncadd [#allocation4], 4294967040 }
  0x38   :  { %52 = vsyncpa [#allocation3], 1 }
  0x39   :  { %53 = vsyncpa [#allocation4], 1 }

</bundles_post_ra>
